<compile_context>
chip_gen: v7x
topology: tpu7x:2x2x1
jax: 0.10.0
libtpu: 0.0.40
codegen_flags: <defaults>
</compile_context>

<pallas_src>
import functools

import jax
import jax.numpy as jnp
from jax.experimental import pallas as pl
from jax.experimental.pallas import tpu as pltpu

POS_WEIGHT = 1.0
NEG_WEIGHT = 8.0
EPS = 1e-07
LANES = 128


def _wbce_kernel(pred_ref, tgt_ref, loss_ref, acc_ref, *, n, block_rows, needs_mask):
    step = pl.program_id(0)

    @pl.when(step == 0)
    def _init():
        acc_ref[...] = jnp.zeros_like(acc_ref)

    o = pred_ref[...].astype(jnp.float32)
    t = tgt_ref[...].astype(jnp.float32)

    # Exact fidelity with the reference: positive branch iff target == 1.
    is_pos = t == jnp.float32(1.0)

    # Select-before-log: one log per element.
    x = jnp.where(is_pos, o, 1.0 - o) + jnp.float32(EPS)

    if needs_mask:
        # Only edge blocks / the lane tail contain invalid elements (possibly
        # garbage from Pallas' out-of-bounds block padding).  Force x -> 1.0
        # there so log(1) == 0 contributes nothing to the sum.
        row = jax.lax.broadcasted_iota(jnp.int32, x.shape, 0)
        lane = jax.lax.broadcasted_iota(jnp.int32, x.shape, 1)
        remaining = n - step * (block_rows * LANES)
        x = jnp.where(row * LANES + lane < remaining, x, jnp.float32(1.0))

    # Fold the BCE negation into the weight: loss_i = (-w_i) * log(x_i).
    w = jnp.where(is_pos, jnp.float32(-POS_WEIGHT), jnp.float32(-NEG_WEIGHT))

    # Block-shaped partial sums: plain VPU adds per block; the single
    # cross-lane (XLU) reduce is deferred to the final grid step.
    acc_ref[...] += w * jnp.log(x)

    @pl.when(step == pl.num_programs(0) - 1)
    def _finalize():
        loss_ref[0, 0] = jnp.sum(acc_ref[...]) * jnp.float32(1.0 / n)


def weighted_bce_loss(outputs, targets, *, max_block_rows=2048):
    """outputs, targets: 1-D arrays of the same length N. Returns scalar f32."""
    assert outputs.shape == targets.shape and outputs.ndim == 1
    n = outputs.shape[0]
    assert n > 0

    rows = pl.cdiv(n, LANES)
    if rows <= max_block_rows:
        # Single block spanning the full row extent (always a legal block
        # shape, even when rows is not a multiple of 8).
        block_rows = rows
        num_blocks = 1
    else:
        # Tiled: second-to-last block dim must be a multiple of 8 (f32).
        block_rows = max(8, (min(max_block_rows, rows) // 8) * 8)
        num_blocks = pl.cdiv(rows, block_rows)

    lane_pad = rows * LANES - n
    # Mask needed iff the (rows, 128) view or the grid tiling over-covers N.
    needs_mask = (lane_pad != 0) or (num_blocks * block_rows != rows)

    def as_lane_dense(v, fill):
        if lane_pad:
            # Padded values are masked in-kernel; benign fill keeps log() sane.
            v = jnp.pad(v, (0, lane_pad), constant_values=fill)
        return v.reshape(rows, LANES)  # contiguous reshape: no copy

    o2 = as_lane_dense(outputs, 0.5)
    t2 = as_lane_dense(targets, 0.0)

    kernel = functools.partial(
        _wbce_kernel, n=n, block_rows=block_rows, needs_mask=needs_mask
    )

    loss = pl.pallas_call(
        kernel,
        out_shape=jax.ShapeDtypeStruct((1, 1), jnp.float32),
        grid=(num_blocks,),
        in_specs=[
            pl.BlockSpec((block_rows, LANES), lambda i: (i, 0)),
            pl.BlockSpec((block_rows, LANES), lambda i: (i, 0)),
        ],
        out_specs=pl.BlockSpec(memory_space=pltpu.SMEM),
        scratch_shapes=[pltpu.VMEM((block_rows, LANES), jnp.float32)],
        compiler_params=pltpu.CompilerParams(
            dimension_semantics=("arbitrary",),  # reduction axis (accumulator)
        ),
    )(o2, t2)
    # TODO(synk): on v7x a leading size-2 "parallel" axis could split the
    # reduction across both TensorCores, but this kernel is HBM-bound and the
    # cores share HBM bandwidth, so it is left single-core.
    return loss[0, 0]


def _reference(outputs, targets):
    o = outputs.astype(jnp.float32)
    t = targets.astype(jnp.float32)
    pos = POS_WEIGHT * (-jnp.log(o + EPS))
    neg = NEG_WEIGHT * (-jnp.log(1.0 - o + EPS))
    return jnp.mean(jnp.where(t == 1.0, pos, neg))


if __name__ == "__main__":
    key = jax.random.PRNGKey(0)

    # (N, max_block_rows): exercises
    #   256  : lane-aligned, single block, no pad / no mask (fast path)
    #   300  : ragged lane tail, single block, masked
    #   5000 : multi-block accumulator + ragged lane tail
    #   4224 : lane-aligned but ragged ROW tiling (Pallas edge-block garbage)
    cases = [(256, 2048), (300, 2048), (5000, 8), (4224, 8)]

    ok = True
    for n, mbr in cases:
        key, k_o, k_t = jax.random.split(key, 3)
        outputs = jax.random.uniform(
            k_o, (n,), dtype=jnp.float32, minval=0.01, maxval=0.99
        )
        targets = (jax.random.uniform(k_t, (n,)) > 0.5).astype(jnp.float32)

        loss = weighted_bce_loss(outputs, targets, max_block_rows=mbr)
        loss = jax.block_until_ready(loss)

        ref = _reference(outputs, targets)
        ok = ok and bool(jnp.allclose(loss, ref, rtol=1e-5, atol=1e-5))
        assert ok, (n, mbr, float(loss), float(ref))

    print("KERNEL_OK")
</pallas_src>

<mosaic_0001>
module attributes {stable_mosaic.version = 11 : i64} {
  func.func @_wbce_kernel(%arg0: i32, %arg1: memref<2x128xf32, #tpu.memory_space<vmem>>, %arg2: memref<2x128xf32, #tpu.memory_space<vmem>>, %arg3: memref<1x1xf32, #tpu.memory_space<smem>>, %arg4: memref<2x128xf32, #tpu.memory_space<vmem>>) attributes {dimension_semantics = [#tpu.dimension_semantics<arbitrary>], iteration_bounds = array<i64: 1>, scalar_prefetch = 0 : i64, scratch_operands = 1 : i64, tpu.core_type = #tpu.core_type<tc>, window_params = [{transform_indices = @transform_0, window_bounds = array<i64: 2, 128>}, {transform_indices = @transform_1, window_bounds = array<i64: 2, 128>}, {transform_indices = @transform_2, window_bounds = array<i64: 1, 1>}]} {
    %c0_i32 = arith.constant 0 : i32
    %0 = arith.cmpi eq, %arg0, %c0_i32 : i32
    %1 = arith.extui %0 : i1 to i32
    %c0_i32_0 = arith.constant 0 : i32
    %2 = arith.cmpi ne, %1, %c0_i32_0 : i32
    scf.if %2 {
      %cst_14 = arith.constant 0.000000e+00 : f32
      %23 = vector.broadcast %cst_14 : f32 to vector<2x128xf32>
      %c0_15 = arith.constant 0 : index
      %c0_16 = arith.constant 0 : index
      %24 = vector.load %arg4[%c0_15, %c0_16] : memref<2x128xf32, #tpu.memory_space<vmem>>, vector<2x128xf32>
      tpu.vector_store %arg4[%c0_15, %c0_16], %23 {strides = array<i32>} : memref<2x128xf32, #tpu.memory_space<vmem>>, vector<2x128xf32>,
    } else {
    }
    %c0 = arith.constant 0 : index
    %c0_1 = arith.constant 0 : index
    %3 = vector.load %arg1[%c0, %c0_1] : memref<2x128xf32, #tpu.memory_space<vmem>>, vector<2x128xf32>
    %c0_2 = arith.constant 0 : index
    %c0_3 = arith.constant 0 : index
    %4 = vector.load %arg2[%c0_2, %c0_3] : memref<2x128xf32, #tpu.memory_space<vmem>>, vector<2x128xf32>
    %cst = arith.constant 1.000000e+00 : f32
    %5 = vector.broadcast %cst : f32 to vector<2x128xf32>
    %6 = arith.cmpf oeq, %4, %5 : vector<2x128xf32>
    %cst_4 = arith.constant 1.000000e+00 : f32
    %7 = vector.broadcast %cst_4 : f32 to vector<2x128xf32>
    %8 = arith.subf %7, %3 : vector<2x128xf32>
    %9 = arith.select %6, %3, %8 : vector<2x128xi1>, vector<2x128xf32>
    %cst_5 = arith.constant 1.000000e-07 : f32
    %10 = vector.broadcast %cst_5 : f32 to vector<2x128xf32>
    %11 = arith.addf %9, %10 : vector<2x128xf32>
    %cst_6 = arith.constant -1.000000e+00 : f32
    %cst_7 = arith.constant -8.000000e+00 : f32
    %12 = vector.broadcast %cst_6 : f32 to vector<2x128xf32>
    %13 = vector.broadcast %cst_7 : f32 to vector<2x128xf32>
    %14 = arith.select %6, %12, %13 : vector<2x128xi1>, vector<2x128xf32>
    %c0_8 = arith.constant 0 : index
    %c0_9 = arith.constant 0 : index
    %15 = vector.load %arg4[%c0_8, %c0_9] : memref<2x128xf32, #tpu.memory_space<vmem>>, vector<2x128xf32>
    %16 = math.log %11 : vector<2x128xf32>
    %17 = arith.mulf %14, %16 : vector<2x128xf32>
    %18 = arith.addf %15, %17 : vector<2x128xf32>
    %c0_10 = arith.constant 0 : index
    %c0_11 = arith.constant 0 : index
    %19 = vector.load %arg4[%c0_10, %c0_11] : memref<2x128xf32, #tpu.memory_space<vmem>>, vector<2x128xf32>
    tpu.vector_store %arg4[%c0_10, %c0_11], %18 {strides = array<i32>} : memref<2x128xf32, #tpu.memory_space<vmem>>, vector<2x128xf32>,
    %c0_i32_12 = arith.constant 0 : i32
    %20 = arith.cmpi eq, %arg0, %c0_i32_12 : i32
    %21 = arith.extui %20 : i1 to i32
    %c0_i32_13 = arith.constant 0 : i32
    %22 = arith.cmpi ne, %21, %c0_i32_13 : i32
    scf.if %22 {
      %c0_14 = arith.constant 0 : index
      %c0_15 = arith.constant 0 : index
      %23 = vector.load %arg4[%c0_14, %c0_15] : memref<2x128xf32, #tpu.memory_space<vmem>>, vector<2x128xf32>
      %24 = vector.shape_cast %23 : vector<2x128xf32> to vector<1x2x128xf32>
      %cst_16 = arith.constant dense<0.000000e+00> : vector<1xf32>
      %25 = vector.multi_reduction <add>, %24, %cst_16 [1, 2] : vector<1x2x128xf32> to vector<1xf32>
      %26 = vector.shape_cast %25 : vector<1xf32> to vector<1x1x1xf32>
      %27 = vector.extract %26[0, 0, 0] : f32 from vector<1x1x1xf32>
      %cst_17 = arith.constant 3.906250e-03 : f32
      %28 = arith.mulf %27, %cst_17 : f32
      %c0_18 = arith.constant 0 : index
      %c0_19 = arith.constant 0 : index
      %29 = memref.load %arg3[%c0_18, %c0_19] : memref<1x1xf32, #tpu.memory_space<smem>>
      memref.store %28, %arg3[%c0_18, %c0_19] : memref<1x1xf32, #tpu.memory_space<smem>>
    } else {
    }
    return
  }
  func.func @transform_0(%arg0: i32) -> (i32, i32) {
    %c0_i32 = arith.constant 0 : i32
    %c0_i32_0 = arith.constant 0 : i32
    return %arg0, %c0_i32 : i32, i32
  }
  func.func @transform_1(%arg0: i32) -> (i32, i32) {
    %c0_i32 = arith.constant 0 : i32
    %c0_i32_0 = arith.constant 0 : i32
    return %arg0, %c0_i32 : i32, i32
  }
  func.func @transform_2(%arg0: i32) -> (i32, i32) {
    %c0_i32 = arith.constant 0 : i32
    %c0_i32_0 = arith.constant 0 : i32
    %c0_i32_1 = arith.constant 0 : i32
    return %c0_i32, %c0_i32_0 : i32, i32
  }
}

</mosaic_0001>

<bundles_post_ra>
// kernel: tpu_custom_call.1
= control target key start
LH: loop header
LB: loop body
LE: loop exit
PB: predicated region body
PF: predicated region fallthrough
CT: control target
= control target key end

     0   :  { %7 = vsyncpa [#allocation4], 0  ;;  %s164_s0 = inlined_call_operand.hbm [shape: f32[2,128], index: 0, kind: input, shape index: {}]   ;;  %s165_s1 = inlined_call_operand.vmem [shape: f32[2,128], index: 1, kind: input, shape index: {}]   ;;  %s166_s2 = inlined_call_operand.hbm [shape: f32[1,1], index: 2, kind: output, shape index: {}]  }
   0x1   :  { %8 = vsyncpa [#allocation5], 0  ;;  %s118_s9 = smov [#allocation3]   ;;  %s82_s13 = scalar_lea.hbm %s164_s0, 32 }
   0x2   :  { %s15_s10 = sshll.u32 %s118_s9, 4  ;;  %p83_p0 = scmp.ne.s32.totalorder %s164_s0, %s82_s13  ;;  %s16_s10 = int_to_ptr.vmem [resolvable:$true] %s15_s10 }
   0x3   :  { %p86_p1 = scmp.lt.u32.totalorder %s82_s13, %s164_s0 }
   0x5   :  { %p88_p2 = pnand %p86_p1, %p83_p0 }
   0x7   :  { %91 = shalt.err (!%p88_p2)
}
   0x8   :  { %s92_s18 = scalar_lea.vmem %s16_s10, 32  ;;  %p97_p4 = scmp.lt.s32.totalorder %s16_s10, %s16_s10 }
   0x9   :  { %p93_p3 = scmp.ne.s32.totalorder %s16_s10, %s92_s18  ;;  %p98_p5 = scmp.lt.s32.totalorder %s92_s18, %s92_s18 }
   0xb   :  { %p99_p6 = por %p98_p5, %p97_p4 }
   0xd   :  { %p100_p7 = pnand %p99_p6, %p93_p3 }
   0xf   :  { %103 = shalt.err (!%p100_p7)
}
  0x10   :  { %18 = dma.hbm_to_vmem [thread:$0]  %s164_s0, 32, %s16_s10, [#allocation4]  }
  0x11   :  { %114 = dma.done.wait [#allocation4], 32  }
  0x12   :  { %115 = vsyncadd [#allocation4], 4294967264  ;;  %v119_v0 = vmov 0.0   ;;  %v29_v1 = vld [vmem:[#allocation3] sm:$0x3]  ;;  %v120_v7 = vmov -8.0  }
  0x13   :  { %28 = vst [vmem:[#allocation2] sm:$0x3] %v119_v0  ;;  %v30_v2 = vld [vmem:[%s165_s1] sm:$0x3]  ;;  %v32_v3 = vsub.f32 1.0, %v29_v1  ;;  %vm46_vm1 = vcmask 1041408  }
  0x14   :  { %vm31_vm0 = vcmp.eq.f32.partialorder %v30_v2, 1.0  ;;  %s104_s25 = scalar_lea.hbm %s166_s2, 16 }
  0x15   :  { %v33_v4 = vsel %vm31_vm0, %v29_v1, %v32_v3  ;;  %v35_v8 = vsel %vm31_vm0, -1.0, %v120_v7  ;;  %p105_p8 = scmp.ne.s32.totalorder %s166_s2, %s104_s25  ;;  %p108_p9 = scmp.lt.u32.totalorder %s104_s25, %s166_s2 }
  0x16   :  { %v34_v5 = vadd.f32 1e-07, %v33_v4 }
  0x17   :  { %p110_p10 = pnand %p108_p9, %p105_p8 }
  0x18   :  { %80 = vlog2.f32 %v34_v5 }
  0x1a   :  { %v36_v10 = vld [vmem:[#allocation2] sm:$0x3] }
  0x22   :  { %v81_v6 = vpop.eup %80 }
  0x23   :  { %v38_v9 = vmul.f32 0.6931472, %v81_v6 }
  0x25   :  { %v39_v11 = vmul.f32 %v38_v9, %v35_v8 }
  0x27   :  { %v40_v12 = vadd.f32 %v39_v11, %v36_v10 }
  0x29   :  { %41 = vst [vmem:[#allocation2] sm:$0x3] %v40_v12 }
  0x30   :  { %v45_v13 = vld [vmem:[#allocation2] sm:$0x3] }
  0x31   :  { %v47_v14 = vsel %vm46_vm1, %v45_v13, 0.0 }
  0x32   :  { %48 = vadd.xlane.f32.xlu0 %v47_v14 }
  0xbf   :  { %v49_v15 = vpop.xlane.xlu0 %48 }
  0xc0   :  { %v50_v16 = vrot.slane %v49_v15, 4 }
  0xc2   :  { %v51_v17 = vadd.f32 %v50_v16, %v49_v15 }
  0xc4   :  { %v52_v18 = vrot.slane %v51_v17, 2 }
  0xc6   :  { %v53_v19 = vadd.f32 %v52_v18, %v51_v17 }
  0xc8   :  { %v54_v20 = vrot.slane %v53_v19, 1 }
  0xca   :  { %v55_v21 = vadd.f32 %v54_v20, %v53_v19 }
  0xcc   :  { %74 = vpush %v55_v21 }
  0xfd   :  { %s75_s0 = spop %74 }
  0xfe   :  { %s57_s1 = smul.f32 0.00390625, %s75_s0 }
 0x100   :  { %59 = sst [smem:[#allocation6]] %s57_s1 }
 0x101   :  { %113 = shalt.err (!%p110_p10)
}
 0x102   :  { %s121_s30 = smov [#allocation6]  }
 0x103   :  { %67 = dma.smem_to_hbm %s121_s30, 16, %s166_s2, [#allocation5]  }
 0x104   :  { %116 = dma.done.wait [#allocation5], 16  }
 0x105   :  { %117 = vsyncadd [#allocation5], 4294967280 }
 0x106   :  { %71 = sfence }
 0x107   :  { %72 = vsyncpa [#allocation4], 1 }
 0x108   :  { %73 = vsyncpa [#allocation5], 1 }

</bundles_post_ra>
